<compile_context>
chip_gen: v5e
topology: v5e:2x2
jax: 0.10.0
libtpu: 0.0.40
codegen_flags: <defaults>
</compile_context>

<pallas_src>
import jax
import jax.numpy as jnp
import numpy as np
from jax.experimental import pallas as pl
from jax.experimental.pallas import tpu as pltpu

MAX_EMB_SIZE = 128  # config.MAX_EMB_SIZE


def _round_up(x, m):
    return ((x + m - 1) // m) * m


# ---------------------------------------------------------------------------
# Pallas kernel: post-gather forward for one batch tile.
# ---------------------------------------------------------------------------
def _neumf_kernel(
    u_ref,                     # [TB, 2E] bf16  = [u_mlp*mask | u_mf*mf_mask]
    i_ref,                     # [TB, 2E] bf16  = [i_mlp*mask | i_mf*mf_mask]
    w1u_ref, w1i_ref,          # [E, E]   bf16  = fc_w[:, :E].T , fc_w[:, E:].T
    b1_ref,                    # [1, E]   f32
    w2m_ref, w2f_ref,          # [1, E]   f32   (aff_w split halves)
    b2_ref,                    # [1, 1]   f32
    out_ref,                   # [TB, 1]  f32 logits
):
    E = w1u_ref.shape[0]
    u_row = u_ref[...]
    i_row = i_ref[...]

    # ---- MLP branch: concat([u_mlp, i_mlp]) @ W1.T == u_mlp@W1u + i_mlp@W1i.
    #      (Lane slices at multiples of 128 are tile-aligned -> free.)
    h = (jnp.dot(u_row[:, :E], w1u_ref[...], preferred_element_type=jnp.float32)
         + jnp.dot(i_row[:, :E], w1i_ref[...], preferred_element_type=jnp.float32)
         + b1_ref[...])
    h = jnp.maximum(h, 0.0)

    # ---- GMF branch: tables are pre-masked; upcast before the multiply
    #      (v5e VPU has no bf16 ALU).
    mf = u_row[:, E:].astype(jnp.float32) * i_row[:, E:].astype(jnp.float32)

    # ---- Final affine: VPU multiply + lane reduction (no N=1 MXU dot).
    logits = jnp.sum(h * w2m_ref[...] + mf * w2f_ref[...],
                     axis=-1, keepdims=True) + b2_ref[...]
    out_ref[...] = logits.astype(out_ref.dtype)


def neumf_pallas_forward(users, items, params, *, max_tile_b=4096):
    """users, items: int32 [B]. Returns logits [B, 1] float32."""
    E = MAX_EMB_SIZE
    B = int(users.shape[0])
    if B == 0:
        return jnp.zeros((0, 1), jnp.float32)

    # Batch tile: multiple of 16 (bf16 sublane tile).  Large tiles amortize the
    # per-grid-step overhead; cap so the grid keeps >=2 steps when B allows it
    # (lets dimension_semantics=("parallel",) use both v7x TensorCores).
    tile_b = min(max_tile_b, _round_up(B, 16))
    if B > 32 and _round_up(B, tile_b) == tile_b:
        tile_b = _round_up((B + 1) // 2, 16)
    padded_b = _round_up(B, tile_b)
    if padded_b != B:
        pad = padded_b - B
        users = jnp.concatenate([users, jnp.zeros((pad,), users.dtype)])
        items = jnp.concatenate([items, jnp.zeros((pad,), items.dtype)])

    # --- glue: ONE fused-row gather per user / item (512 B contiguous rows) --
    u_rows = params["user_table_bf16"][users]            # [Bp, 2E] bf16
    i_rows = params["item_table_bf16"][items]            # [Bp, 2E] bf16

    grid = (padded_b // tile_b,)

    def row_spec(width):
        return pl.BlockSpec((tile_b, width), lambda i: (i, 0))

    def const_spec(shape):
        # Grid-invariant block index -> Pallas does not re-DMA across steps.
        return pl.BlockSpec(shape, lambda i: (0, 0))

    out = pl.pallas_call(
        _neumf_kernel,
        out_shape=jax.ShapeDtypeStruct((padded_b, 1), jnp.float32),
        grid=grid,
        in_specs=[
            row_spec(2 * E),          # u_rows
            row_spec(2 * E),          # i_rows
            const_spec((E, E)),       # W1 user half (bf16)
            const_spec((E, E)),       # W1 item half (bf16)
            const_spec((1, E)),       # b1
            const_spec((1, E)),       # w2 (mlp half)
            const_spec((1, E)),       # w2 (mf half)
            const_spec((1, 1)),       # b2
        ],
        out_specs=row_spec(1),
        compiler_params=pltpu.CompilerParams(
            dimension_semantics=("parallel",)),
    )(u_rows, i_rows,
      params["w1_user_bf16"], params["w1_item_bf16"], params["fc_b_row"],
      params["aff_w_mlp_row"], params["aff_w_mf_row"], params["aff_b_11"])

    return out[:B]


# ---------------------------------------------------------------------------
# Deterministic parameter construction (mirrors NeuMF.__init__ / update_sizes)
# ---------------------------------------------------------------------------
def make_params(key, num_users, num_items, user_sizes, item_sizes):
    E = MAX_EMB_SIZE
    ks = jax.random.split(key, 8)

    def xavier(k, shape):
        fan_in, fan_out = shape[1], shape[0]
        limit = np.sqrt(6.0 / (fan_in + fan_out))
        return jax.random.uniform(k, shape, jnp.float32, -limit, limit)

    params = {
        "emb_user_mlp": xavier(ks[0], (num_users, E)),
        "emb_item_mlp": xavier(ks[1], (num_items, E)),
        "emb_user_mf": xavier(ks[2], (num_users, E)),
        "emb_item_mf": xavier(ks[3], (num_items, E)),
        "fc_w": xavier(ks[4], (E, 2 * E)),                 # Linear(2E -> E), [out, in]
        "fc_b": jax.random.uniform(ks[5], (E,), jnp.float32, -0.05, 0.05),
        "aff_w": xavier(ks[6], (1, 2 * E)),                # Linear(2E -> 1), [out, in]
        "aff_b": jax.random.uniform(ks[7], (1,), jnp.float32, -0.05, 0.05),
    }

    # update_sizes(): per-row MLP masks from user_sizes/item_sizes
    user_sizes = np.asarray(user_sizes)
    item_sizes = np.asarray(item_sizes)
    ar = np.arange(E)
    user_mask = (ar[None, :] < user_sizes[:, None]).astype(np.float32)
    item_mask = (ar[None, :] < item_sizes[:, None]).astype(np.float32)

    # MF mask size computed exactly as in the module
    mean_user_mlp = np.mean(user_sizes)
    mean_item_mlp = np.mean(item_sizes)
    max_table_size = E * (num_items + num_users)
    mf_ratio = (mean_user_mlp * num_users + mean_item_mlp * num_items) / max_table_size
    mf_size = int(round(mf_ratio * E))
    mf_mask_row = (ar < mf_size).astype(np.float32)
    user_mf_mask = np.broadcast_to(mf_mask_row, (num_users, E)).copy()
    item_mf_mask = np.broadcast_to(mf_mask_row, (num_items, E)).copy()

    # f32 masks kept for the pure-JAX reference
    params["user_mask"] = jnp.asarray(user_mask)
    params["item_mask"] = jnp.asarray(item_mask)
    params["user_mf_mask"] = jnp.asarray(user_mf_mask)
    params["item_mf_mask"] = jnp.asarray(item_mf_mask)

    # --- kernel-layout parameters, precomputed once -------------------------
    # Fused, PRE-MASKED bf16 per-entity tables: one 512 B row per user/item
    # contains both branches -> one gather each, no wrapper concat, no
    # mask/size streaming, no in-kernel mask construction.
    mf_mask_j = jnp.asarray(mf_mask_row)
    params["user_table_bf16"] = jnp.concatenate(
        [params["emb_user_mlp"] * params["user_mask"],
         params["emb_user_mf"] * mf_mask_j[None, :]],
        axis=-1).astype(jnp.bfloat16)                               # [U, 2E]
    params["item_table_bf16"] = jnp.concatenate(
        [params["emb_item_mlp"] * params["item_mask"],
         params["emb_item_mf"] * mf_mask_j[None, :]],
        axis=-1).astype(jnp.bfloat16)                               # [I, 2E]

    # fc_w is [E, 2E] ([out, in]); split the input dim and transpose once.
    params["w1_user_bf16"] = params["fc_w"][:, :E].T.astype(jnp.bfloat16)  # [E, E]
    params["w1_item_bf16"] = params["fc_w"][:, E:].T.astype(jnp.bfloat16)  # [E, E]
    params["fc_b_row"] = params["fc_b"].reshape(1, E)                # [1, E] f32
    params["aff_w_mlp_row"] = params["aff_w"][:, :E]                 # [1, E] f32
    params["aff_w_mf_row"] = params["aff_w"][:, E:]                  # [1, E] f32
    params["aff_b_11"] = params["aff_b"].reshape(1, 1)               # [1, 1] f32
    params["mf_size"] = mf_size
    return params


# Pure-JAX f32 reference of the PyTorch forward, for verification.
def neumf_reference(users, items, params):
    u_mlp = params["emb_user_mlp"][users] * params["user_mask"][users]
    i_mlp = params["emb_item_mlp"][items] * params["item_mask"][items]
    u_mf = params["emb_user_mf"][users] * params["user_mf_mask"][users]
    i_mf = params["emb_item_mf"][items] * params["item_mf_mask"][items]
    mlp_vec = jnp.concatenate([u_mlp, i_mlp], axis=-1)
    mf_vec = u_mf * i_mf
    mlp_vec = jnp.maximum(mlp_vec @ params["fc_w"].T + params["fc_b"], 0.0)
    vec = jnp.concatenate([mlp_vec, mf_vec], axis=-1)
    return vec @ params["aff_w"].T + params["aff_b"]


if __name__ == "__main__":
    num_users, num_items, B = 16, 32, 8
    key = jax.random.PRNGKey(0)
    k_params, k_u, k_i = jax.random.split(key, 3)

    # deterministic per-row embedding sizes (1..MAX_EMB_SIZE)
    user_sizes = [int(x) for x in (np.arange(num_users) * 7) % MAX_EMB_SIZE + 1]
    item_sizes = [int(x) for x in (np.arange(num_items) * 11) % MAX_EMB_SIZE + 1]

    params = make_params(k_params, num_users, num_items, user_sizes, item_sizes)

    users = jax.random.randint(k_u, (B,), 0, num_users, dtype=jnp.int32)
    items = jax.random.randint(k_i, (B,), 0, num_items, dtype=jnp.int32)

    logits = neumf_pallas_forward(users, items, params)
    jax.block_until_ready(logits)

    ref = neumf_reference(users, items, params)
    assert logits.shape == (B, 1)
    # Embeddings/W1 are streamed in bf16 (f32 accumulation), so compare against
    # the f32 reference with a bf16-appropriate tolerance.
    np.testing.assert_allclose(np.asarray(logits), np.asarray(ref), rtol=2e-2, atol=2e-2)

    print("KERNEL_OK")
</pallas_src>

<mosaic_0001>
module attributes {stable_mosaic.version = 11 : i64} {
  func.func @_neumf_kernel(%arg0: i32, %arg1: memref<16x256xbf16, #tpu.memory_space<vmem>>, %arg2: memref<16x256xbf16, #tpu.memory_space<vmem>>, %arg3: memref<128x128xbf16, #tpu.memory_space<vmem>>, %arg4: memref<128x128xbf16, #tpu.memory_space<vmem>>, %arg5: memref<1x128xf32, #tpu.memory_space<vmem>>, %arg6: memref<1x128xf32, #tpu.memory_space<vmem>>, %arg7: memref<1x128xf32, #tpu.memory_space<vmem>>, %arg8: memref<1x1xf32, #tpu.memory_space<vmem>>, %arg9: memref<16x1xf32, #tpu.memory_space<vmem>>) attributes {dimension_semantics = [#tpu.dimension_semantics<parallel>], iteration_bounds = array<i64: 1>, scalar_prefetch = 0 : i64, scratch_operands = 0 : i64, tpu.core_type = #tpu.core_type<tc>, window_params = [{transform_indices = @transform_0, window_bounds = array<i64: 16, 256>}, {transform_indices = @transform_1, window_bounds = array<i64: 16, 256>}, {pipeline_mode = #tpu.pipeline_mode<synchronous>, transform_indices = @transform_2, window_bounds = array<i64: 128, 128>}, {pipeline_mode = #tpu.pipeline_mode<synchronous>, transform_indices = @transform_3, window_bounds = array<i64: 128, 128>}, {pipeline_mode = #tpu.pipeline_mode<synchronous>, transform_indices = @transform_4, window_bounds = array<i64: 1, 128>}, {pipeline_mode = #tpu.pipeline_mode<synchronous>, transform_indices = @transform_5, window_bounds = array<i64: 1, 128>}, {pipeline_mode = #tpu.pipeline_mode<synchronous>, transform_indices = @transform_6, window_bounds = array<i64: 1, 128>}, {pipeline_mode = #tpu.pipeline_mode<synchronous>, transform_indices = @transform_7, window_bounds = array<i64: 1, 1>}, {transform_indices = @transform_8, window_bounds = array<i64: 16, 1>}]} {
    %c0 = arith.constant 0 : index
    %c0_0 = arith.constant 0 : index
    %0 = vector.load %arg1[%c0, %c0_0] : memref<16x256xbf16, #tpu.memory_space<vmem>>, vector<16x256xbf16>
    %c0_1 = arith.constant 0 : index
    %c0_2 = arith.constant 0 : index
    %1 = vector.load %arg2[%c0_1, %c0_2] : memref<16x256xbf16, #tpu.memory_space<vmem>>, vector<16x256xbf16>
    %2 = vector.extract_strided_slice %0 {offsets = [0, 0], sizes = [16, 128], strides = [1, 1]} : vector<16x256xbf16> to vector<16x128xbf16>
    %c0_3 = arith.constant 0 : index
    %c0_4 = arith.constant 0 : index
    %3 = vector.load %arg3[%c0_3, %c0_4] : memref<128x128xbf16, #tpu.memory_space<vmem>>, vector<128x128xbf16>
    %cst = arith.constant dense<0.000000e+00> : vector<16x128xf32>
    %4 = tpu.matmul %2, %3, %cst {dimension_numbers = #tpu.dot_dimension_numbers<[1], [0], [0], [1], [0, 0, 1, 1], [], []>} : vector<16x128xbf16>, vector<128x128xbf16>, vector<16x128xf32> -> vector<16x128xf32>
    %5 = vector.extract_strided_slice %1 {offsets = [0, 0], sizes = [16, 128], strides = [1, 1]} : vector<16x256xbf16> to vector<16x128xbf16>
    %c0_5 = arith.constant 0 : index
    %c0_6 = arith.constant 0 : index
    %6 = vector.load %arg4[%c0_5, %c0_6] : memref<128x128xbf16, #tpu.memory_space<vmem>>, vector<128x128xbf16>
    %cst_7 = arith.constant dense<0.000000e+00> : vector<16x128xf32>
    %7 = tpu.matmul %5, %6, %cst_7 {dimension_numbers = #tpu.dot_dimension_numbers<[1], [0], [0], [1], [0, 0, 1, 1], [], []>} : vector<16x128xbf16>, vector<128x128xbf16>, vector<16x128xf32> -> vector<16x128xf32>
    %8 = arith.addf %4, %7 : vector<16x128xf32>
    %c0_8 = arith.constant 0 : index
    %c0_9 = arith.constant 0 : index
    %9 = vector.load %arg5[%c0_8, %c0_9] : memref<1x128xf32, #tpu.memory_space<vmem>>, vector<1x128xf32>
    %10 = vector.broadcast %9 : vector<1x128xf32> to vector<16x128xf32>
    %11 = arith.addf %8, %10 : vector<16x128xf32>
    %cst_10 = arith.constant 0.000000e+00 : f32
    %12 = vector.broadcast %cst_10 : f32 to vector<16x128xf32>
    %13 = arith.maximumf %11, %12 : vector<16x128xf32>
    %14 = vector.extract_strided_slice %0 {offsets = [0, 128], sizes = [16, 128], strides = [1, 1]} : vector<16x256xbf16> to vector<16x128xbf16>
    %15 = arith.extf %14 : vector<16x128xbf16> to vector<16x128xf32>
    %16 = vector.extract_strided_slice %1 {offsets = [0, 128], sizes = [16, 128], strides = [1, 1]} : vector<16x256xbf16> to vector<16x128xbf16>
    %17 = arith.extf %16 : vector<16x128xbf16> to vector<16x128xf32>
    %18 = arith.mulf %15, %17 : vector<16x128xf32>
    %c0_11 = arith.constant 0 : index
    %c0_12 = arith.constant 0 : index
    %19 = vector.load %arg6[%c0_11, %c0_12] : memref<1x128xf32, #tpu.memory_space<vmem>>, vector<1x128xf32>
    %20 = vector.broadcast %19 : vector<1x128xf32> to vector<16x128xf32>
    %21 = arith.mulf %13, %20 : vector<16x128xf32>
    %c0_13 = arith.constant 0 : index
    %c0_14 = arith.constant 0 : index
    %22 = vector.load %arg7[%c0_13, %c0_14] : memref<1x128xf32, #tpu.memory_space<vmem>>, vector<1x128xf32>
    %23 = vector.broadcast %22 : vector<1x128xf32> to vector<16x128xf32>
    %24 = arith.mulf %18, %23 : vector<16x128xf32>
    %25 = arith.addf %21, %24 : vector<16x128xf32>
    %cst_15 = arith.constant dense<0.000000e+00> : vector<16xf32>
    %26 = vector.multi_reduction <add>, %25, %cst_15 [1] : vector<16x128xf32> to vector<16xf32>
    %27 = vector.shape_cast %26 : vector<16xf32> to vector<16x1xf32>
    %c0_16 = arith.constant 0 : index
    %c0_17 = arith.constant 0 : index
    %28 = vector.load %arg8[%c0_16, %c0_17] : memref<1x1xf32, #tpu.memory_space<vmem>>, vector<1x1xf32>
    %29 = vector.broadcast %28 : vector<1x1xf32> to vector<16x1xf32>
    %30 = arith.addf %27, %29 : vector<16x1xf32>
    %c0_18 = arith.constant 0 : index
    %c0_19 = arith.constant 0 : index
    %31 = vector.load %arg9[%c0_18, %c0_19] : memref<16x1xf32, #tpu.memory_space<vmem>>, vector<16x1xf32>
    tpu.vector_store %arg9[%c0_18, %c0_19], %30 {strides = array<i32>} : memref<16x1xf32, #tpu.memory_space<vmem>>, vector<16x1xf32>,
    return
  }
  func.func @transform_0(%arg0: i32) -> (i32, i32) {
    %c0_i32 = arith.constant 0 : i32
    %c0_i32_0 = arith.constant 0 : i32
    return %arg0, %c0_i32 : i32, i32
  }
  func.func @transform_1(%arg0: i32) -> (i32, i32) {
    %c0_i32 = arith.constant 0 : i32
    %c0_i32_0 = arith.constant 0 : i32
    return %arg0, %c0_i32 : i32, i32
  }
  func.func @transform_2(%arg0: i32) -> (i32, i32) {
    %c0_i32 = arith.constant 0 : i32
    %c0_i32_0 = arith.constant 0 : i32
    %c0_i32_1 = arith.constant 0 : i32
    return %c0_i32, %c0_i32_0 : i32, i32
  }
  func.func @transform_3(%arg0: i32) -> (i32, i32) {
    %c0_i32 = arith.constant 0 : i32
    %c0_i32_0 = arith.constant 0 : i32
    %c0_i32_1 = arith.constant 0 : i32
    return %c0_i32, %c0_i32_0 : i32, i32
  }
  func.func @transform_4(%arg0: i32) -> (i32, i32) {
    %c0_i32 = arith.constant 0 : i32
    %c0_i32_0 = arith.constant 0 : i32
    %c0_i32_1 = arith.constant 0 : i32
    return %c0_i32, %c0_i32_0 : i32, i32
  }
  func.func @transform_5(%arg0: i32) -> (i32, i32) {
    %c0_i32 = arith.constant 0 : i32
    %c0_i32_0 = arith.constant 0 : i32
    %c0_i32_1 = arith.constant 0 : i32
    return %c0_i32, %c0_i32_0 : i32, i32
  }
  func.func @transform_6(%arg0: i32) -> (i32, i32) {
    %c0_i32 = arith.constant 0 : i32
    %c0_i32_0 = arith.constant 0 : i32
    %c0_i32_1 = arith.constant 0 : i32
    return %c0_i32, %c0_i32_0 : i32, i32
  }
  func.func @transform_7(%arg0: i32) -> (i32, i32) {
    %c0_i32 = arith.constant 0 : i32
    %c0_i32_0 = arith.constant 0 : i32
    %c0_i32_1 = arith.constant 0 : i32
    return %c0_i32, %c0_i32_0 : i32, i32
  }
  func.func @transform_8(%arg0: i32) -> (i32, i32) {
    %c0_i32 = arith.constant 0 : i32
    %c0_i32_0 = arith.constant 0 : i32
    return %arg0, %c0_i32 : i32, i32
  }
}

</mosaic_0001>

<bundles_post_ra>
// kernel: tpu_custom_call.1
= control target key start
LH: loop header
LB: loop body
LE: loop exit
PB: predicated region body
PF: predicated region fallthrough
CT: control target
= control target key end

     0   :  { %s609_s0 = inlined_call_operand.hbm [shape: bf16[16,256], index: 0, kind: input, shape index: {}]   ;;  %s610_s1 = inlined_call_operand.hbm [shape: bf16[16,256], index: 1, kind: input, shape index: {}]   ;;  %s611_s2 = inlined_call_operand.hbm [shape: bf16[128,128], index: 2, kind: input, shape index: {}]   ;;  %s612_s3 = inlined_call_operand.hbm [shape: bf16[128,128], index: 3, kind: input, shape index: {}]   ;;  %s613_s4 = inlined_call_operand.vmem [shape: f32[1,128], index: 4, kind: input, shape index: {}]   ;;  %s614_s5 = inlined_call_operand.vmem [shape: f32[1,128], index: 5, kind: input, shape index: {}]   ;;  %s615_s6 = inlined_call_operand.vmem [shape: f32[1,128], index: 6, kind: input, shape index: {}]   ;;  %s616_s7 = inlined_call_operand.<no memory space> [shape: f32[1,1], index: 7, kind: input, shape index: {}]   ;;  %s617_s8 = inlined_call_operand.vmem [shape: f32[16,1], index: 8, kind: output, shape index: {}]  }
   0x1   :  { %v13_v0 = vstv %s616_s7 }
   0x2   :  { %14 = vst [vmem:[#allocation2] sm:$0x1] %v13_v0 }
   0x3   :  { %15 = vsyncpa [#allocation4], 0 }
   0x4   :  { %16 = vsyncpa [#allocation6], 0 }
   0x5   :  { %17 = vsyncpa [#allocation9], 0  ;;  %s35_s9 = sshll.u32 %s610_s1, 4  ;;  %s526_s10 = smov [#allocation5]   ;;  %s36_s9 = int_to_ptr.hbm [resolvable:$true] %s35_s9 }
   0x6   :  { %s37_s11 = sshll.u32 %s526_s10, 4  ;;  %s22_s14 = sshll.u32 %s609_s0, 4  ;;  %s38_s11 = int_to_ptr.vmem [resolvable:$true] %s37_s11  ;;  %s23_s14 = int_to_ptr.hbm [resolvable:$true] %s22_s14 }
   0x7   :  { %s527_s15 = smov 128   ;;  %s528_s16 = smov 8  }
   0x8   :  { %43 = dma.hbm_to_vmem [thread:$0]  %s36_s9, 256, %s38_s11, [#allocation6], %s527_s15, %s527_s15, %s528_s16  }
   0x9   :  { %s529_s7 = smov [#allocation3]   ;;  %s48_s20 = sshll.u32 %s611_s2, 4  ;;  %s49_s20 = int_to_ptr.hbm [resolvable:$true] %s48_s20 }
   0xa   :  { %s24_s17 = sshll.u32 %s529_s7, 4  ;;  %s530_s1 = smov [#allocation7]   ;;  %s25_s17 = int_to_ptr.vmem [resolvable:$true] %s24_s17 }
   0xb   :  { %30 = dma.hbm_to_vmem [thread:$0]  %s23_s14, 256, %s25_s17, [#allocation4], %s527_s15, %s527_s15, %s528_s16  }
   0xc   :  { %s50_s21 = sshll.u32 %s530_s1, 4  ;;  %s61_s0 = sshll.u32 %s612_s3, 4  ;;  %s51_s21 = int_to_ptr.vmem [resolvable:$true] %s50_s21  ;;  %s62_s0 = int_to_ptr.hbm [resolvable:$true] %s61_s0 }
   0xd   :  { %s531_s24 = smov 64   ;;  %s532_s25 = smov 4  }
   0xe   :  { %56 = dma.hbm_to_vmem [thread:$0]  %s49_s20, 1024, %s51_s21, [#allocation6], %s531_s24, %s531_s24, %s532_s25  }
   0xf   :  { %s533_s26 = smov [#allocation8]  }
  0x10   :  { %s63_s27 = sshll.u32 %s533_s26, 4  ;;  %s64_s27 = int_to_ptr.vmem [resolvable:$true] %s63_s27 }
  0x11   :  { %69 = dma.hbm_to_vmem [thread:$0]  %s62_s0, 1024, %s64_s27, [#allocation9], %s531_s24, %s531_s24, %s532_s25  }
  0x12   :  { %520 = dma.done.wait [#allocation4], 256  }
  0x13   :  { %521 = vsyncadd [#allocation4], 4294967040 }
  0x14   :  { %522 = dma.done.wait [#allocation6], 1280  }
  0x15   :  { %523 = vsyncadd [#allocation6], 4294966016 }
  0x16   :  { %524 = dma.done.wait [#allocation9], 1024  }
  0x17   :  { %525 = vsyncadd [#allocation9], 4294966272  ;;  %v411_v1 = vld [vmem:[#allocation8 + $0x38] sm:$0xff]  ;;  %v410_v3 = vld [vmem:[#allocation8 + $0x30] sm:$0xff]  ;;  %vm312_vm0 = vcmask 7168  }
  0x18   :  { %v403_v2 = vld [vmem:[#allocation7 + $0x38] sm:$0xff]  ;;  %184 = vmatpush.bf16.msra.mxu0 %v411_v1  ;;  %v402_v4 = vld [vmem:[#allocation7 + $0x30] sm:$0xff]  ;;  %v409_v5 = vld [vmem:[#allocation8 + $0x28] sm:$0xff] }
  0x19   :  { %252 = vmatpush.bf16.msra.mxu1 %v403_v2  ;;  %v401_v6 = vld [vmem:[#allocation7 + $0x28] sm:$0xff]  ;;  %v408_v7 = vld [vmem:[#allocation8 + $0x20] sm:$0xff]  ;;  %v407_v9 = vld [vmem:[#allocation8 + $0x18] sm:$0xff] }
  0x1a   :  { %v400_v8 = vld [vmem:[#allocation7 + $0x20] sm:$0xff]  ;;  %v399_v10 = vld [vmem:[#allocation7 + $0x18] sm:$0xff]  ;;  %v406_v11 = vld [vmem:[#allocation8 + $0x10] sm:$0xff] }
  0x1b   :  { %v398_v12 = vld [vmem:[#allocation7 + $0x10] sm:$0xff]  ;;  %v405_v13 = vld [vmem:[#allocation8 + $0x8] sm:$0xff]  ;;  %v404_v15 = vld [vmem:[#allocation8] sm:$0xff] }
  0x1c   :  { %185 = vmatpush.bf16.msra.mxu0 %v410_v3  ;;  %v397_v14 = vld [vmem:[#allocation7 + $0x8] sm:$0xff]  ;;  %v396_v16 = vld [vmem:[#allocation7] sm:$0xff]  ;;  %v324_v17 = vld [vmem:[#allocation5] sm:$0xf] }
  0x1d   :  { %253 = vmatpush.bf16.msra.mxu1 %v402_v4  ;;  %v395_v18 = vld [vmem:[#allocation5 + $0x4] sm:$0xf0]  ;;  %v360_v19 = vld [vmem:[#allocation3] sm:$0xf]  ;;  %v394_v20 = vld [vmem:[#allocation3 + $0x4] sm:$0xf0] }
  0x1e   :  { %v325_v21 = vor.u32 %v395_v18, %v324_v17  ;;  %v361_v22 = vor.u32 %v394_v20, %v360_v19  ;;  %v94_v23 = vld [vmem:[#allocation3] sm:$0xff]  ;;  %v96_v24 = vld [vmem:[#allocation5] sm:$0xff]  ;;  %v95_v29 = vld [vmem:[#allocation3 + $0x8] sm:$0xff] }
  0x1f   :  { %v274_v25 = vrot.slane %v94_v23, 4  ;;  %v280_v26 = vrot.slane %v96_v24, 4  ;;  %v97_v30 = vld [vmem:[#allocation5 + $0x8] sm:$0xff]  ;;  %v275_v37 = vrot.slane %v95_v29, 4 }
  0x20   :  { %186 = vmatpush.bf16.msra.mxu0 %v409_v5  ;;  %v420_v31 = vld [vmem:[%s613_s4] ss:$0 sm:$0xff]  ;;  %v281_v38 = vrot.slane %v97_v30, 4 }
  0x21   :  { %254 = vmatpush.bf16.msra.mxu1 %v401_v6  ;;  %v278_v27 = vunpack.c.l.bf16 %v274_v25  ;;  %v284_v28 = vunpack.c.l.bf16 %v280_v26  ;;  %v422_v36 = vld [vmem:[%s615_s6] ss:$0 sm:$0xff]  ;;  %v279_v43 = vunpack.c.l.bf16 %v275_v37 }
  0x22   :  { %v421_v40 = vld [vmem:[%s614_s5] ss:$0 sm:$0xff]  ;;  %v285_v44 = vunpack.c.l.bf16 %v281_v38 }
  0x23   :  { %v286_v35 = vmul.f32 %v284_v28, %v278_v27  ;;  %v423_v56 = vld [vmem:[#allocation2] ss:$0 sm:$0xff] }
  0x24   :  { %187 = vmatpush.bf16.msra.mxu0 %v408_v7  ;;  %v287_v50 = vmul.f32 %v285_v44, %v279_v43 }
  0x25   :  { %255 = vmatpush.bf16.msra.mxu1 %v400_v8  ;;  %v298_v42 = vmul.f32 %v422_v36, %v286_v35 }
  0x26   :  { %v299_v53 = vmul.f32 %v422_v36, %v287_v50 }
  0x28   :  { %188 = vmatpush.bf16.msra.mxu0 %v407_v9 }
  0x29   :  { %256 = vmatpush.bf16.msra.mxu1 %v399_v10 }
  0x2c   :  { %189 = vmatpush.bf16.msra.mxu0 %v406_v11 }
  0x2d   :  { %257 = vmatpush.bf16.msra.mxu1 %v398_v12 }
  0x30   :  { %190 = vmatpush.bf16.msra.mxu0 %v405_v13 }
  0x31   :  { %258 = vmatpush.bf16.msra.mxu1 %v397_v14 }
  0x34   :  { %191 = vmatpush.bf16.msra.mxu0 %v404_v15 }
  0x35   :  { %259 = vmatpush.bf16.msra.mxu1 %v396_v16 }
  0x37   :  { %192 = vmatmul.bf16.vlgmr.msra.gmra.mxu0 %v325_v21 }
  0x38   :  { %260 = vmatmul.bf16.vlgmr.msra.gmra.mxu1 %v361_v22 }
  0xb4   :  { %v193_v32 = vpop.f32.mrf.mxu0 }
  0xb5   :  { %v261_v33 = vpop.f32.mrf.mxu1 }
  0xb6   :  { %v262_v34 = vadd.f32 %v261_v33, %v193_v32 }
  0xb8   :  { %v270_v39 = vadd.f32 %v420_v31, %v262_v34 }
  0xba   :  { %v272_v41 = vmax.f32 %v270_v39, 0.0 }
  0xbc   :  { %v292_v45 = vmul.f32 %v421_v40, %v272_v41  ;;  %v195_v46 = vpop.f32.mrf.mxu0 }
  0xbd   :  { %v263_v47 = vpop.f32.mrf.mxu1 }
  0xbe   :  { %v264_v48 = vadd.f32 %v263_v47, %v195_v46  ;;  %v300_v49 = vadd.f32 %v298_v42, %v292_v45 }
  0xc0   :  { %v271_v51 = vadd.f32 %v420_v31, %v264_v48  ;;  %302 = vadd.xlane.f32.xlu0 %v300_v49 }
  0xc2   :  { %v273_v52 = vmax.f32 %v271_v51, 0.0 }
  0xc4   :  { %v293_v54 = vmul.f32 %v421_v40, %v273_v52 }
  0xc6   :  { %v301_v55 = vadd.f32 %v299_v53, %v293_v54 }
  0xc8   :  { %304 = vadd.xlane.f32.xlu0 %v301_v55 }
 0x133   :  { %v303_v57 = vpop.xlane.xlu0 %302 }
 0x134   :  { %v310_v58 = vadd.f32 %v423_v56, %v303_v57 }
 0x136   :  { %313 = vst.msk [vmem:[%s617_s8] sm:$0xff] %vm312_vm0, %v310_v58 }
 0x13b   :  { %v305_v59 = vpop.xlane.xlu0 %304 }
 0x13c   :  { %v311_v60 = vadd.f32 %v423_v56, %v305_v59 }
 0x13e   :  { %314 = vst.msk [vmem:[%s617_s8 + $0x8] sm:$0xff] %vm312_vm0, %v311_v60 }
 0x13f   :  { %319 = vsyncpa [#allocation4], 1 }
 0x140   :  { %320 = vsyncpa [#allocation6], 1 }
 0x141   :  { %321 = vsyncpa [#allocation9], 1 }

</bundles_post_ra>
